<compile_context>
chip_gen: v6e
topology: v6e:2x2x1
jax: 0.10.0
libtpu: 0.0.40
codegen_flags: <defaults>
</compile_context>

<pallas_src>
import math
import functools

import jax
import jax.numpy as jnp
from jax.experimental import pallas as pl
from jax.experimental.pallas import tpu as pltpu


# ----------------------------------------------------------------------------
# Generation-aware VMEM budgeting (v5e/v6e: 128 MiB physical, v7x: 64 MiB).
# ----------------------------------------------------------------------------
def _vmem_limit_bytes():
    cap = 64 * 1024 * 1024
    try:
        cap = int(getattr(pltpu.get_tpu_info(), "vmem_capacity_bytes", cap))
    except Exception:
        pass
    # Scoped limit = 3/4 of physical (96 MiB on v5e/v6e, 48 MiB on v7x).
    return max(16 * 1024 * 1024, (min(cap, 128 * 1024 * 1024) * 3) // 4)


_VMEM_LIMIT = _vmem_limit_bytes()
_TILE_BUDGET = _VMEM_LIMIT // 2      # headroom for temps / vregs / model slack
_COMPUTE_DTYPE = jnp.bfloat16        # MXU-native on v5e / v6e / v7x


def _tile(dim, preferred, quantum):
    """Largest tile <= preferred that divides `dim` and is quantum-aligned."""
    if dim <= preferred:
        return dim
    t = (preferred // quantum) * quantum
    while t >= quantum:
        if dim % t == 0:
            return t
        t -= quantum
    return dim


def _pick_tm(M, bytes_per_row, fixed_bytes, budget, cap=1024):
    avail = max(budget - fixed_bytes, bytes_per_row * 8)
    pref = max(8, min(cap, avail // max(bytes_per_row, 1)))
    return _tile(M, int(pref), 8)


# ----------------------------------------------------------------------------
# Kernel 1: fused Q/K/V projection (self-attention path)
#   x is DMA'd / cast once per row-block and reused for three bf16 matmuls;
#   three separate (M, D) outputs -> no column-slice copies downstream.
# ----------------------------------------------------------------------------
def qkv_kernel(x_ref, w_ref, b_ref, q_ref, k_ref, v_ref):
    xb = x_ref[...].astype(_COMPUTE_DTYPE)
    q_ref[...] = jnp.dot(xb, w_ref[0], preferred_element_type=jnp.float32) + b_ref[0]
    k_ref[...] = jnp.dot(xb, w_ref[1], preferred_element_type=jnp.float32) + b_ref[1]
    v_ref[...] = jnp.dot(xb, w_ref[2], preferred_element_type=jnp.float32) + b_ref[2]


def pallas_fused_qkv(x2d, wqkv_t, bqkv):
    """x2d: (M,K) f32; wqkv_t: (3,K,D) bf16; bqkv: (3,1,D) f32 -> 3x (M,D) f32."""
    M, K = x2d.shape
    D = wqkv_t.shape[2]
    tn = _tile(D, 256, 128)
    per_row = 8 * K + 24 * tn                 # x dbuf + 3 f32 output dbufs
    fixed = 12 * K * tn + 24 * tn             # (3,K,tn) bf16 weight dbuf + bias
    tm = _pick_tm(M, per_row, fixed, _TILE_BUDGET)
    grid = (M // tm, D // tn)
    out_sd = jax.ShapeDtypeStruct((M, D), jnp.float32)
    return pl.pallas_call(
        qkv_kernel,
        grid=grid,
        out_shape=(out_sd, out_sd, out_sd),
        in_specs=[
            pl.BlockSpec((tm, K), lambda i, j: (i, 0)),       # x resident over j
            pl.BlockSpec((3, K, tn), lambda i, j: (0, 0, j)),
            pl.BlockSpec((3, 1, tn), lambda i, j: (0, 0, j)),
        ],
        out_specs=(
            pl.BlockSpec((tm, tn), lambda i, j: (i, j)),
            pl.BlockSpec((tm, tn), lambda i, j: (i, j)),
            pl.BlockSpec((tm, tn), lambda i, j: (i, j)),
        ),
        compiler_params=pltpu.CompilerParams(
            dimension_semantics=("parallel", "parallel"),
            vmem_limit_bytes=_VMEM_LIMIT),
    )(x2d, wqkv_t, bqkv)


# ----------------------------------------------------------------------------
# Kernel 2: plain linear  y = x @ W + b   (cross-attention path)
#   Full-K block (K = model_dim fits VMEM) -> no accumulator / init / finalize.
# ----------------------------------------------------------------------------
def linear_kernel(x_ref, w_ref, b_ref, o_ref):
    o_ref[...] = jnp.dot(x_ref[...].astype(_COMPUTE_DTYPE), w_ref[...],
                         preferred_element_type=jnp.float32) + b_ref[...]


def pallas_linear(x2d, w_t, b2):
    """x2d: (M,K) f32; w_t: (K,N) bf16 pre-transposed; b2: (1,N) f32 -> (M,N)."""
    M, K = x2d.shape
    N = w_t.shape[1]
    tn = _tile(N, 256, 128)
    per_row = 8 * K + 8 * tn
    fixed = 4 * K * tn + 8 * tn
    tm = _pick_tm(M, per_row, fixed, _TILE_BUDGET)
    grid = (M // tm, N // tn)
    # TODO(synk): for very large model_dim (bf16 (K,tn) weight slab near the
    # VMEM budget) add a K-tiled accumulator variant (k grid axis + pl.when).
    return pl.pallas_call(
        linear_kernel,
        grid=grid,
        out_shape=jax.ShapeDtypeStruct((M, N), jnp.float32),
        in_specs=[
            pl.BlockSpec((tm, K), lambda i, j: (i, 0)),
            pl.BlockSpec((K, tn), lambda i, j: (0, j)),
            pl.BlockSpec((1, tn), lambda i, j: (0, j)),
        ],
        out_specs=pl.BlockSpec((tm, tn), lambda i, j: (i, j)),
        compiler_params=pltpu.CompilerParams(
            dimension_semantics=("parallel", "parallel"),
            vmem_limit_bytes=_VMEM_LIMIT),
    )(x2d, w_t, b2)


# ----------------------------------------------------------------------------
# Kernel 3: scaled-dot attention, G heads x tq queries per grid step.
#   1/sqrt(d) is folded into wq/bq at prepare_params time.
# ----------------------------------------------------------------------------
def attn_kernel(q_ref, k_ref, v_ref, ctx_ref, attn_ref):
    q = q_ref[...].astype(_COMPUTE_DTYPE)                 # (G, tq, d)
    k = k_ref[...].astype(_COMPUTE_DTYPE)                 # (G, S,  d)
    s = jnp.einsum("gqd,gkd->gqk", q, k,
                   preferred_element_type=jnp.float32)    # (G, tq, S) f32
    m = jnp.max(s, axis=-1, keepdims=True)
    e = jnp.exp(s - m)
    denom = jnp.sum(e, axis=-1, keepdims=True)
    p = e * pl.reciprocal(denom, approx=True)             # divide on the EUP slot
    attn_ref[...] = p
    ctx_ref[...] = jnp.einsum("gqk,gkd->gqd", p.astype(_COMPUTE_DTYPE),
                              v_ref[...].astype(_COMPUTE_DTYPE),
                              preferred_element_type=jnp.float32)


def _pick_attn_tiles(BH, S, d, budget):
    tq = _tile(S, 256, 8)
    # f32 live bytes per head: q/ctx dbufs + k/v dbufs + attn dbuf + s/e/p temps.
    per_head = 4 * (4 * tq * d + 4 * S * d + 6 * tq * S)
    g = max(1, min(BH, budget // max(per_head, 1)))
    # Keep >= ~4 grid steps so the pipeline (and v7x's 2 TensorCores) has work.
    while g > 1 and (BH // g) * (S // tq) < 4:
        g -= 1
    while BH % g:
        g -= 1
    return g, tq


def pallas_attention(q3, k3, v3):
    """q3/k3/v3: (BH,S,d) f32 -> (context (BH,S,d) f32, attention (BH,S,S) f32)."""
    BH, S, d = q3.shape
    G, tq = _pick_attn_tiles(BH, S, d, _TILE_BUDGET)
    grid = (BH // G, S // tq)
    # TODO(synk): emit the attention matrix in bf16 (halves the dominant HBM
    # writeback) and pack heads into a lane-dense (tq, G*d) ctx block when
    # d < 128, if downstream consumers tolerate the precision/layout change.
    return pl.pallas_call(
        attn_kernel,
        grid=grid,
        out_shape=(jax.ShapeDtypeStruct((BH, S, d), jnp.float32),
                   jax.ShapeDtypeStruct((BH, S, S), jnp.float32)),
        in_specs=[
            pl.BlockSpec((G, tq, d), lambda i, t: (i, t, 0)),
            pl.BlockSpec((G, S, d), lambda i, t: (i, 0, 0)),   # K resident over t
            pl.BlockSpec((G, S, d), lambda i, t: (i, 0, 0)),   # V resident over t
        ],
        out_specs=(
            pl.BlockSpec((G, tq, d), lambda i, t: (i, t, 0)),
            pl.BlockSpec((G, tq, S), lambda i, t: (i, t, 0)),
        ),
        compiler_params=pltpu.CompilerParams(
            dimension_semantics=("parallel", "parallel"),
            vmem_limit_bytes=_VMEM_LIMIT),
    )(q3, k3, v3)


# ----------------------------------------------------------------------------
# Kernel 4: output projection fused with residual add + LayerNorm
#   out = LN( residual + (ctx @ Wf + bf) )
# ----------------------------------------------------------------------------
def fc_res_ln_kernel(x_ref, w_ref, b_ref, r_ref, g_ref, beta_ref, o_ref, *, eps):
    y = jnp.dot(x_ref[...].astype(_COMPUTE_DTYPE), w_ref[...],
                preferred_element_type=jnp.float32)
    y = y + b_ref[...] + r_ref[...]                        # (tm, D) f32
    mean = jnp.mean(y, axis=-1, keepdims=True)
    cen = y - mean
    var = jnp.mean(cen * cen, axis=-1, keepdims=True)      # biased var (torch LN)
    o_ref[...] = cen * jax.lax.rsqrt(var + eps) * g_ref[...] + beta_ref[...]


def pallas_fc_residual_layernorm(ctx2d, w_t, b2, res2d, gamma2, beta2, *, eps=1e-5):
    """ctx2d: (M,K) f32; w_t: (K,D) bf16; res2d: (M,D) f32 -> (M,D) f32."""
    M, K = ctx2d.shape
    N = w_t.shape[1]                     # == model_dim (LN needs the full row)
    per_row = 8 * K + 24 * N             # x dbuf + residual/out dbufs + temps
    fixed = 4 * K * N + 24 * N           # bf16 weight dbuf + bias/gamma/beta
    tm = _pick_tm(M, per_row, fixed, _TILE_BUDGET)
    grid = (M // tm,)
    kern = functools.partial(fc_res_ln_kernel, eps=eps)
    return pl.pallas_call(
        kern,
        grid=grid,
        out_shape=jax.ShapeDtypeStruct((M, N), jnp.float32),
        in_specs=[
            pl.BlockSpec((tm, K), lambda i: (i, 0)),
            pl.BlockSpec((K, N), lambda i: (0, 0)),      # weight resident (one DMA)
            pl.BlockSpec((1, N), lambda i: (0, 0)),
            pl.BlockSpec((tm, N), lambda i: (i, 0)),
            pl.BlockSpec((1, N), lambda i: (0, 0)),
            pl.BlockSpec((1, N), lambda i: (0, 0)),
        ],
        out_specs=pl.BlockSpec((tm, N), lambda i: (i, 0)),
        compiler_params=pltpu.CompilerParams(
            dimension_semantics=("parallel",),
            vmem_limit_bytes=_VMEM_LIMIT),
    )(ctx2d, w_t, b2, res2d, gamma2, beta2)


# ----------------------------------------------------------------------------
# One-time parameter preparation (NOT in the per-forward path)
# ----------------------------------------------------------------------------
def prepare_params(params, num_head):
    """Pre-transpose weights to (in,out), cast to bf16, pre-stack Q/K/V for the
    fused self-attention path, and fold the 1/sqrt(d) scale into wq/bq."""
    D = params["wq"].shape[0]
    d = D // num_head
    scale = 1.0 / math.sqrt(d)
    wq = (params["wq"] * scale).astype(jnp.float32)
    bq = (params["bq"] * scale).astype(jnp.float32)
    f32, bf16 = jnp.float32, _COMPUTE_DTYPE
    return {
        "wqkv_t": jnp.stack([wq.T, params["wk"].T, params["wv"].T], 0).astype(bf16),
        "bqkv": jnp.stack([bq, params["bk"], params["bv"]], 0)[:, None, :].astype(f32),
        "wq_t": wq.T.astype(bf16), "bq": bq.reshape(1, D).astype(f32),
        "wk_t": params["wk"].T.astype(bf16), "bk": params["bk"].reshape(1, D).astype(f32),
        "wv_t": params["wv"].T.astype(bf16), "bv": params["bv"].reshape(1, D).astype(f32),
        "wf_t": params["wf"].T.astype(bf16), "bf": params["bf"].reshape(1, D).astype(f32),
        "ln_g": params["ln_g"].reshape(1, D).astype(f32),
        "ln_b": params["ln_b"].reshape(1, D).astype(f32),
    }


# ----------------------------------------------------------------------------
# Full module forward (Pallas kernels + free JAX reshapes)
# ----------------------------------------------------------------------------
def multi_head_attention_forward(prep, q, k, v, num_head):
    B, S, D = q.shape
    d = D // num_head
    residual = q.reshape(B * S, D)

    if (q is k) and (k is v):
        # Self-attention: fused QKV projection — activation read once; three
        # separate (M, D) outputs, so no column-slice copies afterwards.
        ql, kl, vl = pallas_fused_qkv(q.reshape(B * S, D),
                                      prep["wqkv_t"], prep["bqkv"])
    else:
        ql = pallas_linear(q.reshape(B * S, D), prep["wq_t"], prep["bq"])
        kl = pallas_linear(k.reshape(B * S, D), prep["wk_t"], prep["bk"])
        vl = pallas_linear(v.reshape(B * S, D), prep["wv_t"], prep["bv"])

    # Exact torch `.view(B*H, -1, d)` semantics (row-major reinterpretation).
    q3 = ql.reshape(B * num_head, S, d)
    k3 = kl.reshape(B * num_head, S, d)
    v3 = vl.reshape(B * num_head, S, d)

    # TODO(synk): attention_mask path not exercised (mask=None in this test);
    # a mask add/where would go inside attn_kernel before the softmax.
    context, attention = pallas_attention(q3, k3, v3)

    # torch `.contiguous().view(B, -1, D)` — free flat reinterpretation.
    context2d = context.reshape(B * S, D)

    # Output projection + (dropout_rate=0 -> identity) + residual + LayerNorm.
    out = pallas_fc_residual_layernorm(
        context2d, prep["wf_t"], prep["bf"], residual,
        prep["ln_g"], prep["ln_b"]).reshape(B, S, D)
    return out, attention


# ----------------------------------------------------------------------------
# Pure-JAX f32 reference (for a sanity check)
# ----------------------------------------------------------------------------
def reference_forward(params, q, k, v, num_head):
    B, S, D = q.shape
    d = D // num_head
    residual = q
    ql = q @ params["wq"].T + params["bq"]
    kl = k @ params["wk"].T + params["bk"]
    vl = v @ params["wv"].T + params["bv"]
    q3 = ql.reshape(B * num_head, S, d)
    k3 = kl.reshape(B * num_head, S, d)
    v3 = vl.reshape(B * num_head, S, d)
    scores = jnp.einsum("bqd,bkd->bqk", q3, k3) / math.sqrt(d)
    attn = jax.nn.softmax(scores, axis=-1)
    ctx = jnp.einsum("bqk,bkd->bqd", attn, v3).reshape(B, S, D)
    out = ctx @ params["wf"].T + params["bf"]
    x = residual + out
    mean = jnp.mean(x, axis=-1, keepdims=True)
    var = jnp.mean((x - mean) ** 2, axis=-1, keepdims=True)
    out = (x - mean) / jnp.sqrt(var + 1e-5) * params["ln_g"] + params["ln_b"]
    return out, attn


if __name__ == "__main__":
    # Small shapes consistent with the module: model_dim divisible by num_head.
    B, S, D, H = 2, 8, 32, 4

    key = jax.random.PRNGKey(0)
    keys = jax.random.split(key, 12)

    def init_w(k_, shape, scale=0.05):
        return (scale * jax.random.normal(k_, shape)).astype(jnp.float32)

    params = {
        "wq": init_w(keys[0], (D, D)), "bq": init_w(keys[1], (D,)),
        "wk": init_w(keys[2], (D, D)), "bk": init_w(keys[3], (D,)),
        "wv": init_w(keys[4], (D, D)), "bv": init_w(keys[5], (D,)),
        "wf": init_w(keys[6], (D, D)), "bf": init_w(keys[7], (D,)),
        "ln_g": jnp.ones((D,), jnp.float32),   # nn.LayerNorm default weight
        "ln_b": jnp.zeros((D,), jnp.float32),  # nn.LayerNorm default bias
    }
    prep = prepare_params(params, H)           # one-time weight prep

    x = jax.random.normal(keys[8], (B, S, D), jnp.float32)
    k_in = jax.random.normal(keys[9], (B, S, D), jnp.float32)
    v_in = jax.random.normal(keys[10], (B, S, D), jnp.float32)

    # bf16 MXU inputs + approx reciprocal -> compare to the f32 reference with a
    # correspondingly relaxed (but still tight) tolerance.
    RTOL, ATOL = 2e-2, 2e-2

    # 1) Self-attention path (exercises the fused QKV projection).
    out_sa, attn_sa = multi_head_attention_forward(prep, x, x, x, H)
    out_sa = jax.block_until_ready(out_sa)
    attn_sa = jax.block_until_ready(attn_sa)
    out_sa_ref, attn_sa_ref = reference_forward(params, x, x, x, H)
    assert out_sa.shape == (B, S, D) and attn_sa.shape == (B * H, S, S)
    assert jnp.allclose(out_sa, out_sa_ref, rtol=RTOL, atol=ATOL)
    assert jnp.allclose(attn_sa, attn_sa_ref, rtol=RTOL, atol=ATOL)

    # 2) Cross-attention path (separate q/k/v projections).
    out_ca, attn_ca = multi_head_attention_forward(prep, x, k_in, v_in, H)
    out_ca = jax.block_until_ready(out_ca)
    attn_ca = jax.block_until_ready(attn_ca)
    out_ca_ref, attn_ca_ref = reference_forward(params, x, k_in, v_in, H)
    assert jnp.allclose(out_ca, out_ca_ref, rtol=RTOL, atol=ATOL)
    assert jnp.allclose(attn_ca, attn_ca_ref, rtol=RTOL, atol=ATOL)

    print("KERNEL_OK")
</pallas_src>

<mosaic_0001>
module attributes {stable_mosaic.version = 11 : i64} {
  func.func @qkv_kernel(%arg0: i32, %arg1: i32, %arg2: memref<16x32xf32, #tpu.memory_space<vmem>>, %arg3: memref<3x32x32xbf16, #tpu.memory_space<vmem>>, %arg4: memref<3x1x32xf32, #tpu.memory_space<vmem>>, %arg5: memref<16x32xf32, #tpu.memory_space<vmem>>, %arg6: memref<16x32xf32, #tpu.memory_space<vmem>>, %arg7: memref<16x32xf32, #tpu.memory_space<vmem>>) attributes {dimension_semantics = [#tpu.dimension_semantics<parallel>, #tpu.dimension_semantics<parallel>], iteration_bounds = array<i64: 1, 1>, scalar_prefetch = 0 : i64, scratch_operands = 0 : i64, tpu.core_type = #tpu.core_type<tc>, window_params = [{transform_indices = @transform_0, window_bounds = array<i64: 16, 32>}, {transform_indices = @transform_1, window_bounds = array<i64: 3, 32, 32>}, {transform_indices = @transform_2, window_bounds = array<i64: 3, 1, 32>}, {transform_indices = @transform_3, window_bounds = array<i64: 16, 32>}, {transform_indices = @transform_4, window_bounds = array<i64: 16, 32>}, {transform_indices = @transform_5, window_bounds = array<i64: 16, 32>}]} {
    %c0 = arith.constant 0 : index
    %c0_0 = arith.constant 0 : index
    %0 = vector.load %arg2[%c0, %c0_0] : memref<16x32xf32, #tpu.memory_space<vmem>>, vector<16x32xf32>
    %1 = arith.truncf %0 : vector<16x32xf32> to vector<16x32xbf16>
    %c0_1 = arith.constant 0 : index
    %c0_2 = arith.constant 0 : index
    %c0_3 = arith.constant 0 : index
    %2 = vector.load %arg3[%c0_1, %c0_2, %c0_3] : memref<3x32x32xbf16, #tpu.memory_space<vmem>>, vector<1x32x32xbf16>
    %3 = vector.shape_cast %2 : vector<1x32x32xbf16> to vector<32x32xbf16>
    %cst = arith.constant dense<0.000000e+00> : vector<16x32xf32>
    %4 = tpu.matmul %1, %3, %cst {dimension_numbers = #tpu.dot_dimension_numbers<[1], [0], [0], [1], [0, 0, 1, 1], [], []>} : vector<16x32xbf16>, vector<32x32xbf16>, vector<16x32xf32> -> vector<16x32xf32>
    %c0_4 = arith.constant 0 : index
    %c0_5 = arith.constant 0 : index
    %c0_6 = arith.constant 0 : index
    %5 = vector.load %arg4[%c0_4, %c0_5, %c0_6] : memref<3x1x32xf32, #tpu.memory_space<vmem>>, vector<1x1x32xf32>
    %6 = vector.shape_cast %5 : vector<1x1x32xf32> to vector<1x32xf32>
    %7 = vector.broadcast %6 : vector<1x32xf32> to vector<16x32xf32>
    %8 = arith.addf %4, %7 : vector<16x32xf32>
    %c0_7 = arith.constant 0 : index
    %c0_8 = arith.constant 0 : index
    %9 = vector.load %arg5[%c0_7, %c0_8] : memref<16x32xf32, #tpu.memory_space<vmem>>, vector<16x32xf32>
    tpu.vector_store %arg5[%c0_7, %c0_8], %8 {strides = array<i32>} : memref<16x32xf32, #tpu.memory_space<vmem>>, vector<16x32xf32>,
    %c1 = arith.constant 1 : index
    %c0_9 = arith.constant 0 : index
    %c0_10 = arith.constant 0 : index
    %10 = vector.load %arg3[%c1, %c0_9, %c0_10] : memref<3x32x32xbf16, #tpu.memory_space<vmem>>, vector<1x32x32xbf16>
    %11 = vector.shape_cast %10 : vector<1x32x32xbf16> to vector<32x32xbf16>
    %cst_11 = arith.constant dense<0.000000e+00> : vector<16x32xf32>
    %12 = tpu.matmul %1, %11, %cst_11 {dimension_numbers = #tpu.dot_dimension_numbers<[1], [0], [0], [1], [0, 0, 1, 1], [], []>} : vector<16x32xbf16>, vector<32x32xbf16>, vector<16x32xf32> -> vector<16x32xf32>
    %c1_12 = arith.constant 1 : index
    %c0_13 = arith.constant 0 : index
    %c0_14 = arith.constant 0 : index
    %13 = vector.load %arg4[%c1_12, %c0_13, %c0_14] : memref<3x1x32xf32, #tpu.memory_space<vmem>>, vector<1x1x32xf32>
    %14 = vector.shape_cast %13 : vector<1x1x32xf32> to vector<1x32xf32>
    %15 = vector.broadcast %14 : vector<1x32xf32> to vector<16x32xf32>
    %16 = arith.addf %12, %15 : vector<16x32xf32>
    %c0_15 = arith.constant 0 : index
    %c0_16 = arith.constant 0 : index
    %17 = vector.load %arg6[%c0_15, %c0_16] : memref<16x32xf32, #tpu.memory_space<vmem>>, vector<16x32xf32>
    tpu.vector_store %arg6[%c0_15, %c0_16], %16 {strides = array<i32>} : memref<16x32xf32, #tpu.memory_space<vmem>>, vector<16x32xf32>,
    %c2 = arith.constant 2 : index
    %c0_17 = arith.constant 0 : index
    %c0_18 = arith.constant 0 : index
    %18 = vector.load %arg3[%c2, %c0_17, %c0_18] : memref<3x32x32xbf16, #tpu.memory_space<vmem>>, vector<1x32x32xbf16>
    %19 = vector.shape_cast %18 : vector<1x32x32xbf16> to vector<32x32xbf16>
    %cst_19 = arith.constant dense<0.000000e+00> : vector<16x32xf32>
    %20 = tpu.matmul %1, %19, %cst_19 {dimension_numbers = #tpu.dot_dimension_numbers<[1], [0], [0], [1], [0, 0, 1, 1], [], []>} : vector<16x32xbf16>, vector<32x32xbf16>, vector<16x32xf32> -> vector<16x32xf32>
    %c2_20 = arith.constant 2 : index
    %c0_21 = arith.constant 0 : index
    %c0_22 = arith.constant 0 : index
    %21 = vector.load %arg4[%c2_20, %c0_21, %c0_22] : memref<3x1x32xf32, #tpu.memory_space<vmem>>, vector<1x1x32xf32>
    %22 = vector.shape_cast %21 : vector<1x1x32xf32> to vector<1x32xf32>
    %23 = vector.broadcast %22 : vector<1x32xf32> to vector<16x32xf32>
    %24 = arith.addf %20, %23 : vector<16x32xf32>
    %c0_23 = arith.constant 0 : index
    %c0_24 = arith.constant 0 : index
    %25 = vector.load %arg7[%c0_23, %c0_24] : memref<16x32xf32, #tpu.memory_space<vmem>>, vector<16x32xf32>
    tpu.vector_store %arg7[%c0_23, %c0_24], %24 {strides = array<i32>} : memref<16x32xf32, #tpu.memory_space<vmem>>, vector<16x32xf32>,
    return
  }
  func.func @transform_0(%arg0: i32, %arg1: i32) -> (i32, i32) {
    %c0_i32 = arith.constant 0 : i32
    %c0_i32_0 = arith.constant 0 : i32
    return %arg0, %c0_i32 : i32, i32
  }
  func.func @transform_1(%arg0: i32, %arg1: i32) -> (i32, i32, i32) {
    %c0_i32 = arith.constant 0 : i32
    %c0_i32_0 = arith.constant 0 : i32
    %c0_i32_1 = arith.constant 0 : i32
    return %c0_i32, %c0_i32_0, %arg1 : i32, i32, i32
  }
  func.func @transform_2(%arg0: i32, %arg1: i32) -> (i32, i32, i32) {
    %c0_i32 = arith.constant 0 : i32
    %c0_i32_0 = arith.constant 0 : i32
    %c0_i32_1 = arith.constant 0 : i32
    return %c0_i32, %c0_i32_0, %arg1 : i32, i32, i32
  }
  func.func @transform_3(%arg0: i32, %arg1: i32) -> (i32, i32) {
    %c0_i32 = arith.constant 0 : i32
    return %arg0, %arg1 : i32, i32
  }
  func.func @transform_4(%arg0: i32, %arg1: i32) -> (i32, i32) {
    %c0_i32 = arith.constant 0 : i32
    return %arg0, %arg1 : i32, i32
  }
  func.func @transform_5(%arg0: i32, %arg1: i32) -> (i32, i32) {
    %c0_i32 = arith.constant 0 : i32
    return %arg0, %arg1 : i32, i32
  }
}

</mosaic_0001>

<bundles_post_ra>
// kernel: tpu_custom_call.1
= control target key start
LH: loop header
LB: loop body
LE: loop exit
PB: predicated region body
PF: predicated region fallthrough
CT: control target
= control target key end

     0   :  { %11 = vsyncpa [#allocation3], 0  ;;  %s567_s0 = inlined_call_operand.hbm [shape: f32[16,32], index: 0, kind: input, shape index: {}]   ;;  %s568_s1 = inlined_call_operand.hbm [shape: bf16[3,32,32], index: 1, kind: input, shape index: {}]   ;;  %s569_s2 = inlined_call_operand.vmem [shape: f32[3,1,32], index: 2, kind: input, shape index: {}]   ;;  %s570_s3 = inlined_call_operand.hbm [shape: f32[16,32], index: 3, kind: output, shape index: {0}]   ;;  %s571_s4 = inlined_call_operand.hbm [shape: f32[16,32], index: 4, kind: output, shape index: {1}]   ;;  %s572_s5 = inlined_call_operand.hbm [shape: f32[16,32], index: 5, kind: output, shape index: {2}]  }
   0x1   :  { %12 = vsyncpa [#allocation6], 0 }
   0x2   :  { %13 = vsyncpa [#allocation4], 0 }
   0x3   :  { %14 = vsyncpa [#allocation9], 0  ;;  %s478_s18 = smov [#allocation2]  }
   0x4   :  { %s20_s19 = sshll.u32 %s478_s18, 4  ;;  %s21_s19 = int_to_ptr.vmem [resolvable:$true] %s20_s19 }
   0x5   :  { %s378_s20 = scalar_lea.vmem %s21_s19, 256  ;;  %p383_p1 = scmp.lt.s32.totalorder %s21_s19, %s21_s19 }
   0x6   :  { %p379_p0 = scmp.ne.s32.totalorder %s21_s19, %s378_s20  ;;  %p384_p2 = scmp.lt.s32.totalorder %s378_s20, %s378_s20 }
   0x8   :  { %p385_p3 = por %p384_p2, %p383_p1 }
   0xa   :  { %p386_p4 = pnand %p385_p3, %p379_p0 }
   0xc   :  { %389 = shalt.err (!%p386_p4)
}
   0xd   :  { %s479_s21 = smov 128   ;;  %s480_s22 = smov 8  }
   0xe   :  { %26 = dma.hbm_to_vmem [thread:$0]  %s567_s0, 256, %s21_s19, [#allocation3], %s479_s21, %s479_s21, %s480_s22  }
   0xf   :  { %s481_s25 = smov [#allocation5]  }
  0x10   :  { %s32_s26 = sshll.u32 %s481_s25, 4  ;;  %s33_s26 = int_to_ptr.vmem [resolvable:$true] %s32_s26 }
  0x11   :  { %s398_s27 = scalar_lea.vmem %s33_s26, 768  ;;  %p403_p6 = scmp.lt.s32.totalorder %s33_s26, %s33_s26 }
  0x12   :  { %p399_p5 = scmp.ne.s32.totalorder %s33_s26, %s398_s27  ;;  %p404_p7 = scmp.lt.s32.totalorder %s398_s27, %s398_s27 }
  0x14   :  { %p405_p8 = por %p404_p7, %p403_p6 }
  0x16   :  { %p406_p9 = pnand %p405_p8, %p399_p5 }
  0x18   :  { %409 = shalt.err (!%p406_p9)
}
  0x19   :  { %s482_s28 = smov 64   ;;  %s483_s29 = smov 4  }
  0x1a   :  { %38 = dma.hbm_to_vmem [thread:$0]  %s568_s1, 768, %s33_s26, [#allocation6], %s482_s28, %s482_s28, %s483_s29  }
  0x1b   :  { %470 = dma.done.wait [#allocation3], 256  }
  0x1c   :  { %471 = vsyncadd [#allocation3], 4294967040 }
  0x1d   :  { %472 = dma.done.wait [#allocation6], 768  }
  0x1e   :  { %473 = vsyncadd [#allocation6], 4294966528  ;;  %v484_v0 = vmov 0.0   ;;  %vm485_vm0 = vmmov 0   ;;  %v364_v1 = vld [vmem:[#allocation5 + $0x8] sm:$0xff]   ;;  %v365_v2 = vld [vmem:[#allocation5 + $0x18] sm:$0xff]  }
  0x1f   :  { %329 = vmatprep.subr.bf16.mxu0 %v484_v0  ;;  %337 = vmatprep.subr.bf16.mxu1 %v484_v0  ;;  %v366_v3 = vld [vmem:[#allocation5] sm:$0xff]   ;;  %v367_v4 = vld [vmem:[#allocation5 + $0x10] sm:$0xff]   ;;  %v49_v6 = vld [vmem:[#allocation2 + $0x8] sm:$0xff]  ;;  %vm74_vm1 = vcmask 261120   ;;  %s486_s9 = smov [#allocation7]   ;;  %s487_s11 = smov [#allocation8]  }
  0x20   :  { %333 = vmatprep.mubr.msk.bf16.mxu0 %vm485_vm0, %v484_v0  ;;  %341 = vmatprep.mubr.msk.bf16.mxu1 %vm485_vm0, %v484_v0  ;;  %v48_v5 = vld [vmem:[#allocation2] sm:$0xff]  ;;  %v368_v8 = vld [vmem:[#allocation5 + $0x28] sm:$0xff]   ;;  %v369_v9 = vld [vmem:[#allocation5 + $0x20] sm:$0xff]   ;;  %s262_s10 = sshll.u32 %s486_s9, 4  ;;  %s274_s12 = sshll.u32 %s487_s11, 4  ;;  %s263_s10 = int_to_ptr.vmem [resolvable:$true] %s262_s10  ;;  %s275_s12 = int_to_ptr.vmem [resolvable:$true] %s274_s12 }
  0x21   :  { %330 = vmatpush3.bf16.msra.mxu0 %v364_v1  ;;  %338 = vmatpush3.bf16.msra.mxu1 %v365_v2  ;;  %v50_v7 = vpack.c.bf16 %v49_v6, %v48_v5  ;;  %v306_v10 = vld [vmem:[%s569_s2] ss:$0 sm:$0xff]  ;;  %v311_v11 = vld [vmem:[%s569_s2 + $0x1] ss:$0 sm:$0xff]  ;;  %v316_v23 = vld [vmem:[%s569_s2 + $0x2] ss:$0 sm:$0xff]  ;;  %p415_p11 = scmp.lt.s32.totalorder %s263_s10, %s263_s10 }
  0x22   :  { %331 = vmatprep.subr.bf16.mxu0 %v484_v0  ;;  %339 = vmatprep.subr.bf16.mxu1 %v484_v0  ;;  %s410_s15 = scalar_lea.vmem %s263_s10, 256 }
  0x23   :  { %p411_p10 = scmp.ne.s32.totalorder %s263_s10, %s410_s15  ;;  %p416_p12 = scmp.lt.s32.totalorder %s410_s15, %s410_s15 }
  0x25   :  { %332 = vmatpush3.bf16.msra.mxu0 %v366_v3  ;;  %340 = vmatpush3.bf16.msra.mxu1 %v367_v4  ;;  %p417_p13 = por %p416_p12, %p415_p11 }
  0x26   :  { %345 = vmatprep.subr.bf16.mxu0 %v484_v0 }
  0x27   :  { %p418_p0 = pnand %p417_p13, %p411_p10 }
  0x28   :  { %334 = vmatmul.mubr.msk.bf16.vlgmr.msra.gmra.mxu0 %vm74_vm1, %v50_v7  ;;  %342 = vmatmul.mubr.msk.bf16.vlgmr.msra.gmra.mxu1 %vm74_vm1, %v50_v7 }
  0x29   :  { %346 = vmatpush3.bf16.msra.mxu0 %v368_v8  ;;  %349 = vmatprep.mubr.msk.bf16.mxu0 %vm485_vm0, %v484_v0 }
  0x2a   :  { %347 = vmatprep.subr.bf16.mxu0 %v484_v0 }
  0x2d   :  { %348 = vmatpush3.bf16.msra.mxu0 %v369_v9 }
  0x30   :  { %350 = vmatmul.mubr.msk.bf16.vlgmr.msra.gmra.mxu0 %vm74_vm1, %v50_v7 }
  0xe8   :  { %v112_v12 = vpop.f32.mrf.mxu0  ;;  %v180_v14 = vpop.f32.mrf.mxu1 }
  0xe9   :  { %v113_v13 = vadd.f32 %v306_v10, %v112_v12  ;;  %v181_v16 = vadd.f32 %v311_v11, %v180_v14 }
  0xea   :  { %v335_v15 = vpop.f32.mrf.mxu0  ;;  %v343_v17 = vpop.f32.mrf.mxu1 }
  0xeb   :  { %119 = vst.msk [vmem:[#allocation7] sm:$0xff] %vm74_vm1, %v113_v13  ;;  %187 = vst.msk [vmem:[#allocation8] sm:$0xff] %vm74_vm1, %v181_v16 }
  0xec   :  { %v115_v18 = vpop.f32.mrf.mxu0  ;;  %v183_v20 = vpop.f32.mrf.mxu1 }
  0xed   :  { %v116_v19 = vadd.f32 %v306_v10, %v115_v18  ;;  %v184_v22 = vadd.f32 %v311_v11, %v183_v20 }
  0xee   :  { %v336_v21 = vpop.f32.mrf.mxu0  ;;  %v344_v24 = vpop.f32.mrf.mxu1 }
  0xef   :  { %120 = vst.msk [vmem:[#allocation7 + $0x8] sm:$0xff] %vm74_vm1, %v116_v19  ;;  %188 = vst.msk [vmem:[#allocation8 + $0x8] sm:$0xff] %vm74_vm1, %v184_v22 }
  0xf0   :  { %v248_v25 = vpop.f32.mrf.mxu0 }
  0xf1   :  { %421 = shalt.err (!%p418_p0)
}
  0xf2   :  { %268 = dma.vmem_to_hbm [thread:$0]  %s263_s10, 256, %s570_s3, [#allocation4], %s479_s21, %s479_s21, %s480_s22   ;;  %v249_v26 = vadd.f32 %v316_v23, %v248_v25 }
  0xf3   :  { %s430_s2 = scalar_lea.vmem %s275_s12, 256  ;;  %p435_p2 = scmp.lt.s32.totalorder %s275_s12, %s275_s12 }
  0xf4   :  { %p431_p1 = scmp.ne.s32.totalorder %s275_s12, %s430_s2  ;;  %p436_p3 = scmp.lt.s32.totalorder %s430_s2, %s430_s2 }
  0xf6   :  { %p437_p4 = por %p436_p3, %p435_p2 }
  0xf8   :  { %p438_p5 = pnand %p437_p4, %p431_p1 }
  0xfa   :  { %441 = shalt.err (!%p438_p5)
}
  0xfb   :  { %280 = dma.vmem_to_hbm [thread:$0]  %s275_s12, 256, %s571_s4, [#allocation9], %s479_s21, %s479_s21, %s480_s22   ;;  %v351_v27 = vpop.f32.mrf.mxu0  ;;  %255 = vst.msk [vmem:[#allocation10] sm:$0xff] %vm74_vm1, %v249_v26 }
  0xfc   :  { %s488_s20 = smov [#allocation10]  }
  0xfd   :  { %s286_s23 = sshll.u32 %s488_s20, 4  ;;  %v251_v28 = vpop.f32.mrf.mxu0  ;;  %s287_s23 = int_to_ptr.vmem [resolvable:$true] %s286_s23 }
  0xfe   :  { %v252_v29 = vadd.f32 %v316_v23, %v251_v28  ;;  %s450_s3 = scalar_lea.vmem %s287_s23, 256  ;;  %p455_p7 = scmp.lt.s32.totalorder %s287_s23, %s287_s23 }
  0xff   :  { %v352_v30 = vpop.f32.mrf.mxu0  ;;  %p451_p6 = scmp.ne.s32.totalorder %s287_s23, %s450_s3  ;;  %p456_p8 = scmp.lt.s32.totalorder %s450_s3, %s450_s3 }
 0x100   :  { %256 = vst.msk [vmem:[#allocation10 + $0x8] sm:$0xff] %vm74_vm1, %v252_v29 }
 0x101   :  { %p457_p9 = por %p456_p8, %p455_p7 }
 0x103   :  { %p458_p10 = pnand %p457_p9, %p451_p6 }
 0x105   :  { %461 = shalt.err (!%p458_p10)
}
 0x106   :  { %292 = dma.vmem_to_hbm [thread:$0]  %s287_s23, 256, %s572_s5, [#allocation9], %s479_s21, %s479_s21, %s480_s22  }
 0x107   :  { %474 = dma.done.wait [#allocation4], 256  }
 0x108   :  { %475 = vsyncadd [#allocation4], 4294967040 }
 0x109   :  { %476 = dma.done.wait [#allocation9], 512  }
 0x10a   :  { %477 = vsyncadd [#allocation9], 4294966784 }
 0x10b   :  { %302 = vsyncpa [#allocation3], 1 }
 0x10c   :  { %303 = vsyncpa [#allocation6], 1 }
 0x10d   :  { %304 = vsyncpa [#allocation4], 1 }
 0x10e   :  { %305 = vsyncpa [#allocation9], 1 }

</bundles_post_ra>
